<compile_context>
chip_gen: v7x
topology: tpu7x:2x2x1
jax: 0.10.0
libtpu: 0.0.40
codegen_flags: <defaults>
</compile_context>

<pallas_src>
import numpy as np
import jax
import jax.numpy as jnp
from jax.experimental import pallas as pl
from jax.experimental.pallas import tpu as pltpu


def fined_network_kernel(x_ref,
                         W1_ref, b1_ref,
                         W2_ref, b2_ref,
                         W3_ref, b3_ref,
                         out_ref):
    x = x_ref[...]                                                           # (TB, D)

    # Linear(D, D) -> ReLU   (Dropout = identity in eval mode)
    h = jnp.dot(x, W1_ref[...], preferred_element_type=jnp.float32) + b1_ref[...]
    h = jnp.maximum(h, 0.0)

    # Linear(D, 64) -> ReLU
    h = jnp.dot(h, W2_ref[...], preferred_element_type=jnp.float32) + b2_ref[...]
    h = jnp.maximum(h, 0.0)

    # Linear(64, D) -> ReLU
    z = jnp.dot(h, W3_ref[...], preferred_element_type=jnp.float32) + b3_ref[...]
    z = jnp.maximum(z, 0.0)

    # softmax(dim=1), row-wise over the feature axis
    z = z - jnp.max(z, axis=-1, keepdims=True)
    e = jnp.exp(z)
    inv = pl.reciprocal(jnp.sum(e, axis=-1, keepdims=True), approx=True)     # EUP slot
    out_ref[...] = (e * inv).astype(out_ref.dtype)


def fined_network_pallas(x, params, *, tb=128):
    """x: (B, D) float32.  params: W1 (D,D), b1 (1,D), W2 (D,64), b2 (1,64), W3 (64,D), b3 (1,D)."""
    B, D = x.shape

    # batch tile: multiple of 8 sublanes for f32, or the whole batch if it is smaller.
    TB = min(tb, B)
    if TB < B:
        TB = max(8, (TB // 8) * 8)
    grid = (pl.cdiv(B, TB),)

    x_spec = pl.BlockSpec((TB, D), lambda i: (i, 0))
    out_spec = pl.BlockSpec((TB, D), lambda i: (i, 0))

    def resident(arr):
        # full-array block, constant block index -> stays resident in VMEM across the grid
        shape = arr.shape
        return pl.BlockSpec(shape, lambda i, n=len(shape): (0,) * n)

    weights = (params["W1"], params["b1"],
               params["W2"], params["b2"],
               params["W3"], params["b3"])

    return pl.pallas_call(
        fined_network_kernel,
        out_shape=jax.ShapeDtypeStruct((B, D), jnp.float32),
        grid=grid,
        in_specs=[x_spec] + [resident(w) for w in weights],
        out_specs=out_spec,
        compiler_params=pltpu.CompilerParams(
            dimension_semantics=("parallel",)),
    )(x, *weights)


# ---------------- pure-JAX reference (for correctness check) ----------------
def fined_network_ref(x, params):
    h = jnp.maximum(x @ params["W1"] + params["b1"], 0.0)
    h = jnp.maximum(h @ params["W2"] + params["b2"], 0.0)
    z = jnp.maximum(h @ params["W3"] + params["b3"], 0.0)
    return jax.nn.softmax(z, axis=1)


if __name__ == "__main__":
    # Small shapes consistent with the module: FinedNetwork(input_dims=32) on a batch of 16.
    D = 32          # input_dims
    H2 = 64         # fixed hidden width from embed_dims=[input_dims, 64, input_dims]
    B = 16
    TB = 8          # small tile so the batch grid (and weight residency) is exercised

    key = jax.random.PRNGKey(0)
    ks = jax.random.split(key, 7)

    def rnd(k, shape, scale=0.2):
        return scale * jax.random.normal(k, shape, dtype=jnp.float32)

    params = {
        "W1": rnd(ks[0], (D, D)),
        "b1": rnd(ks[1], (1, D), 0.05),
        "W2": rnd(ks[2], (D, H2)),
        "b2": rnd(ks[3], (1, H2), 0.05),
        "W3": rnd(ks[4], (H2, D)),
        "b3": rnd(ks[5], (1, D), 0.05),
    }
    x = jax.random.normal(ks[6], (B, D), dtype=jnp.float32)

    out = jax.block_until_ready(fined_network_pallas(x, params, tb=TB))
    ref = jax.block_until_ready(fined_network_ref(x, params))

    assert out.shape == (B, D), out.shape
    # row sums of a softmax must be ~1
    np.testing.assert_allclose(np.asarray(out).sum(axis=1), np.ones(B), rtol=1e-2)
    # loose tolerance: pl.reciprocal(approx=True) is an approximate EUP reciprocal
    np.testing.assert_allclose(np.asarray(out), np.asarray(ref), rtol=1e-2, atol=1e-4)

    print("KERNEL_OK")
</pallas_src>

<mosaic_0001>
module attributes {stable_mosaic.version = 11 : i64} {
  func.func @fined_network_kernel(%arg0: i32, %arg1: memref<8x32xf32, #tpu.memory_space<vmem>>, %arg2: memref<32x32xf32, #tpu.memory_space<vmem>>, %arg3: memref<1x32xf32, #tpu.memory_space<vmem>>, %arg4: memref<32x64xf32, #tpu.memory_space<vmem>>, %arg5: memref<1x64xf32, #tpu.memory_space<vmem>>, %arg6: memref<64x32xf32, #tpu.memory_space<vmem>>, %arg7: memref<1x32xf32, #tpu.memory_space<vmem>>, %arg8: memref<8x32xf32, #tpu.memory_space<vmem>>) attributes {dimension_semantics = [#tpu.dimension_semantics<parallel>], iteration_bounds = array<i64: 2>, scalar_prefetch = 0 : i64, scratch_operands = 0 : i64, tpu.core_type = #tpu.core_type<tc>, window_params = [{transform_indices = @transform_0, window_bounds = array<i64: 8, 32>}, {pipeline_mode = #tpu.pipeline_mode<synchronous>, transform_indices = @transform_1, window_bounds = array<i64: 32, 32>}, {pipeline_mode = #tpu.pipeline_mode<synchronous>, transform_indices = @transform_2, window_bounds = array<i64: 1, 32>}, {pipeline_mode = #tpu.pipeline_mode<synchronous>, transform_indices = @transform_3, window_bounds = array<i64: 32, 64>}, {pipeline_mode = #tpu.pipeline_mode<synchronous>, transform_indices = @transform_4, window_bounds = array<i64: 1, 64>}, {pipeline_mode = #tpu.pipeline_mode<synchronous>, transform_indices = @transform_5, window_bounds = array<i64: 64, 32>}, {pipeline_mode = #tpu.pipeline_mode<synchronous>, transform_indices = @transform_6, window_bounds = array<i64: 1, 32>}, {transform_indices = @transform_7, window_bounds = array<i64: 8, 32>}]} {
    %c0 = arith.constant 0 : index
    %c0_0 = arith.constant 0 : index
    %0 = vector.load %arg1[%c0, %c0_0] : memref<8x32xf32, #tpu.memory_space<vmem>>, vector<8x32xf32>
    %c0_1 = arith.constant 0 : index
    %c0_2 = arith.constant 0 : index
    %1 = vector.load %arg2[%c0_1, %c0_2] : memref<32x32xf32, #tpu.memory_space<vmem>>, vector<32x32xf32>
    %cst = arith.constant dense<0.000000e+00> : vector<8x32xf32>
    %2 = tpu.matmul %0, %1, %cst {dimension_numbers = #tpu.dot_dimension_numbers<[1], [0], [0], [1], [0, 0, 1, 1], [], []>} : vector<8x32xf32>, vector<32x32xf32>, vector<8x32xf32> -> vector<8x32xf32>
    %c0_3 = arith.constant 0 : index
    %c0_4 = arith.constant 0 : index
    %3 = vector.load %arg3[%c0_3, %c0_4] : memref<1x32xf32, #tpu.memory_space<vmem>>, vector<1x32xf32>
    %4 = vector.broadcast %3 : vector<1x32xf32> to vector<8x32xf32>
    %5 = arith.addf %2, %4 : vector<8x32xf32>
    %cst_5 = arith.constant 0.000000e+00 : f32
    %6 = vector.broadcast %cst_5 : f32 to vector<8x32xf32>
    %7 = arith.maximumf %5, %6 : vector<8x32xf32>
    %c0_6 = arith.constant 0 : index
    %c0_7 = arith.constant 0 : index
    %8 = vector.load %arg4[%c0_6, %c0_7] : memref<32x64xf32, #tpu.memory_space<vmem>>, vector<32x64xf32>
    %cst_8 = arith.constant dense<0.000000e+00> : vector<8x64xf32>
    %9 = tpu.matmul %7, %8, %cst_8 {dimension_numbers = #tpu.dot_dimension_numbers<[1], [0], [0], [1], [0, 0, 1, 1], [], []>} : vector<8x32xf32>, vector<32x64xf32>, vector<8x64xf32> -> vector<8x64xf32>
    %c0_9 = arith.constant 0 : index
    %c0_10 = arith.constant 0 : index
    %10 = vector.load %arg5[%c0_9, %c0_10] : memref<1x64xf32, #tpu.memory_space<vmem>>, vector<1x64xf32>
    %11 = vector.broadcast %10 : vector<1x64xf32> to vector<8x64xf32>
    %12 = arith.addf %9, %11 : vector<8x64xf32>
    %cst_11 = arith.constant 0.000000e+00 : f32
    %13 = vector.broadcast %cst_11 : f32 to vector<8x64xf32>
    %14 = arith.maximumf %12, %13 : vector<8x64xf32>
    %c0_12 = arith.constant 0 : index
    %c0_13 = arith.constant 0 : index
    %15 = vector.load %arg6[%c0_12, %c0_13] : memref<64x32xf32, #tpu.memory_space<vmem>>, vector<64x32xf32>
    %cst_14 = arith.constant dense<0.000000e+00> : vector<8x32xf32>
    %16 = tpu.matmul %14, %15, %cst_14 {dimension_numbers = #tpu.dot_dimension_numbers<[1], [0], [0], [1], [0, 0, 1, 1], [], []>} : vector<8x64xf32>, vector<64x32xf32>, vector<8x32xf32> -> vector<8x32xf32>
    %c0_15 = arith.constant 0 : index
    %c0_16 = arith.constant 0 : index
    %17 = vector.load %arg7[%c0_15, %c0_16] : memref<1x32xf32, #tpu.memory_space<vmem>>, vector<1x32xf32>
    %18 = vector.broadcast %17 : vector<1x32xf32> to vector<8x32xf32>
    %19 = arith.addf %16, %18 : vector<8x32xf32>
    %cst_17 = arith.constant 0.000000e+00 : f32
    %20 = vector.broadcast %cst_17 : f32 to vector<8x32xf32>
    %21 = arith.maximumf %19, %20 : vector<8x32xf32>
    %cst_18 = arith.constant dense<0xFF800000> : vector<8xf32>
    %22 = vector.multi_reduction <maximumf>, %21, %cst_18 [1] : vector<8x32xf32> to vector<8xf32>
    %23 = vector.shape_cast %22 : vector<8xf32> to vector<8x1xf32>
    %24 = vector.broadcast %23 : vector<8x1xf32> to vector<8x32xf32>
    %25 = arith.subf %21, %24 : vector<8x32xf32>
    %26 = math.exp %25 : vector<8x32xf32>
    %cst_19 = arith.constant dense<0.000000e+00> : vector<8xf32>
    %27 = vector.multi_reduction <add>, %26, %cst_19 [1] : vector<8x32xf32> to vector<8xf32>
    %28 = vector.shape_cast %27 : vector<8xf32> to vector<8x1xf32>
    %29 = tpu.reciprocal %28 {approx = true} : vector<8x1xf32> -> vector<8x1xf32>
    %30 = vector.broadcast %29 : vector<8x1xf32> to vector<8x32xf32>
    %31 = arith.mulf %26, %30 : vector<8x32xf32>
    %c0_20 = arith.constant 0 : index
    %c0_21 = arith.constant 0 : index
    %32 = vector.load %arg8[%c0_20, %c0_21] : memref<8x32xf32, #tpu.memory_space<vmem>>, vector<8x32xf32>
    tpu.vector_store %arg8[%c0_20, %c0_21], %31 {strides = array<i32>} : memref<8x32xf32, #tpu.memory_space<vmem>>, vector<8x32xf32>,
    return
  }
  func.func @transform_0(%arg0: i32) -> (i32, i32) {
    %c0_i32 = arith.constant 0 : i32
    %c0_i32_0 = arith.constant 0 : i32
    return %arg0, %c0_i32 : i32, i32
  }
  func.func @transform_1(%arg0: i32) -> (i32, i32) {
    %c0_i32 = arith.constant 0 : i32
    %c0_i32_0 = arith.constant 0 : i32
    %c0_i32_1 = arith.constant 0 : i32
    return %c0_i32, %c0_i32_0 : i32, i32
  }
  func.func @transform_2(%arg0: i32) -> (i32, i32) {
    %c0_i32 = arith.constant 0 : i32
    %c0_i32_0 = arith.constant 0 : i32
    %c0_i32_1 = arith.constant 0 : i32
    return %c0_i32, %c0_i32_0 : i32, i32
  }
  func.func @transform_3(%arg0: i32) -> (i32, i32) {
    %c0_i32 = arith.constant 0 : i32
    %c0_i32_0 = arith.constant 0 : i32
    %c0_i32_1 = arith.constant 0 : i32
    return %c0_i32, %c0_i32_0 : i32, i32
  }
  func.func @transform_4(%arg0: i32) -> (i32, i32) {
    %c0_i32 = arith.constant 0 : i32
    %c0_i32_0 = arith.constant 0 : i32
    %c0_i32_1 = arith.constant 0 : i32
    return %c0_i32, %c0_i32_0 : i32, i32
  }
  func.func @transform_5(%arg0: i32) -> (i32, i32) {
    %c0_i32 = arith.constant 0 : i32
    %c0_i32_0 = arith.constant 0 : i32
    %c0_i32_1 = arith.constant 0 : i32
    return %c0_i32, %c0_i32_0 : i32, i32
  }
  func.func @transform_6(%arg0: i32) -> (i32, i32) {
    %c0_i32 = arith.constant 0 : i32
    %c0_i32_0 = arith.constant 0 : i32
    %c0_i32_1 = arith.constant 0 : i32
    return %c0_i32, %c0_i32_0 : i32, i32
  }
  func.func @transform_7(%arg0: i32) -> (i32, i32) {
    %c0_i32 = arith.constant 0 : i32
    %c0_i32_0 = arith.constant 0 : i32
    return %arg0, %c0_i32 : i32, i32
  }
}

</mosaic_0001>

<bundles_post_ra>
// kernel: tpu_custom_call.1
= control target key start
LH: loop header
LB: loop body
LE: loop exit
PB: predicated region body
PF: predicated region fallthrough
CT: control target
= control target key end

     0   :  { %12 = vsyncpa [#allocation3], 0  ;;  %s1040_s0 = inlined_call_operand.vmem [shape: f32[16,32], index: 0, kind: input, shape index: {}]   ;;  %s1041_s1 = inlined_call_operand.vmem [shape: f32[32,32], index: 1, kind: input, shape index: {}]   ;;  %s1042_s2 = inlined_call_operand.vmem [shape: f32[1,32], index: 2, kind: input, shape index: {}]   ;;  %s1043_s3 = inlined_call_operand.vmem [shape: f32[32,64], index: 3, kind: input, shape index: {}]   ;;  %s1044_s4 = inlined_call_operand.vmem [shape: f32[1,64], index: 4, kind: input, shape index: {}]   ;;  %s1045_s5 = inlined_call_operand.vmem [shape: f32[64,32], index: 5, kind: input, shape index: {}]   ;;  %s1046_s6 = inlined_call_operand.vmem [shape: f32[1,32], index: 6, kind: input, shape index: {}]   ;;  %s1047_s7 = inlined_call_operand.hbm [shape: f32[16,32], index: 7, kind: output, shape index: {}]  }
   0x1   :  { %14 = vsyncpa [#allocation3 + $0x1], 0  ;;  %s875_s24 = smov 0   ;;  %s877_s25 = smov 0  }
   0x2   :  { %s879_s26 = smov 0   ;;  %s881_s27 = smov 0  }
   0x3 LB: > { %s896_s28 = sadd.s32 4294967295, %s829_s27   ;;  %s621_s29 = sadd.s32 4294967294, %s829_s27   ;;  %s829_s27 = sphi %s881_s27, %s1053_s27   ;;  %s825_s26 = sphi %s879_s26, %s1052_s26   ;;  %s821_s25 = sphi %s877_s25, %s1051_s25   ;;  %s817_s24 = sphi %s875_s24, %s1050_s24  }
   0x4   : > { %s900_s30 = sadd.s32 1, %s829_s27   ;;  %s179_s8 = sadd.s32 1, %s825_s26 }
   0x5   : > { %s176_s9 = ssub.s32 %s829_s27, %s900_s30  ;;  %p189_p0 = scmp.ne.s32.totalorder %s825_s26, %s821_s25 }
   0x6   : > { %p177_p1 = scmp.eq.s32.totalorder %s176_s9, 0  ;;  %p190_p2 = scmp.eq.s32.totalorder %s896_s28, 1 }
   0x7   : > { %p195_p3 = scmp.ne.s32.totalorder %s821_s25, %s817_s24  ;;  %p196_p4 = scmp.eq.s32.totalorder %s621_s29, 1 }
   0x8   : > { %s911_s10 = scalar_select %p177_p1, %s825_s26, %s179_s8  }
   0x9   : > { %p913_p5 = por %p190_p2, %p189_p0  ;;  %p917_p6 = por %p196_p4, %p195_p3 }
   0xa   : > { %p624_p7 = scmp.ge.s32.totalorder %s829_s27, 1  ;;  %p239_p8 = scmp.lt.s32.totalorder %s829_s27, 3 }
   0xc   : > { %p240_p9 = pnand %p624_p7, %p239_p8 }
   0xd   : > { %v275_v0 = vld [vmem:[%s1041_s1] sm:$0xff] (!%p240_p9)  ;;  %v276_v1 = vld [vmem:[%s1041_s1 + $0x8] sm:$0xff] (!%p240_p9)  ;;  %v277_v2 = vld [vmem:[%s1041_s1 + $0x10] sm:$0xff] (!%p240_p9)  ;;  %v831_v3 = vmov (!%p240_p9), 0.0|0.0   ;;  %vm832_vm0 = vmmov (!%p240_p9), 0   ;;  %v833_v6 = vmov (!%p240_p9), 0.0  }
   0xe   : > { %243 = sbr.rel (%p240_p9) target bundleno = 1002 (0x3ea), region = 48  ;;  %697 = vmatprep.subr.bf16.mxu1 (!%p240_p9), %v831_v3  ;;  %v698_v4 = vpack.c.bf16 (!%p240_p9), %v276_v1, %v275_v0  ;;  %v278_v5 = vld [vmem:[%s1041_s1 + $0x18] sm:$0xff] (!%p240_p9)  ;;  %664 = vmatprep.mubr.msk.f32.mxu1 (!%p240_p9), %vm832_vm0, %v833_v6  ;;  %p270_p10 = scmp.lt.s32.totalorder (!%p240_p9), %s896_s28, 1  ;;  %v361_v8 = vld [vmem:[%s1043_s3] sm:$0xff] (!%p240_p9)  ;;  %v362_v9 = vld [vmem:[%s1043_s3 + $0x8] sm:$0xff] (!%p240_p9)  ;;  %vm286_vm1 = vcmask (!%p240_p9), 261120  }
   0xf   : > { %709 = vmatprep.subr.bf16.mxu0 (!%p240_p9), %v831_v3  ;;  %694 = vmatprep.mubr.msk.f32.mxu0 (!%p240_p9), %vm832_vm0, %v833_v6  ;;  %v701_v7 = vpack.c.bf16 (!%p240_p9), %v278_v5, %v277_v2  ;;  %v704_v11 = vpack.c.bf16 (!%p240_p9), %v362_v9, %v361_v8  ;;  %v363_v12 = vld [vmem:[%s1043_s3 + $0x10] sm:$0xff] (!%p240_p9)  ;;  %v364_v13 = vld [vmem:[%s1043_s3 + $0x18] sm:$0xff] (!%p240_p9)  ;;  %v446_v15 = vld [vmem:[%s1045_s5] sm:$0xff] (!%p240_p9)  ;;  %vm461_vm2 = vcmask (!%p240_p9), 523264   ;;  %s267_s14 = sand.u32 (!%p240_p9), 1, %s821_s25   ;;  %s634_s16 = sshll.u32 (!%p240_p9), %s896_s28, 7 }
  0x10   : > { %699 = vmatpush3.bf16.msra.mxu1 (!%p240_p9), %v698_v4  ;;  %v707_v14 = vpack.c.bf16 (!%p240_p9), %v364_v13, %v363_v12  ;;  %v447_v16 = vld [vmem:[%s1045_s5 + $0x8] sm:$0xff] (!%p240_p9)  ;;  %v448_v17 = vld [vmem:[%s1045_s5 + $0x10] sm:$0xff] (!%p240_p9)  ;;  %v449_v19 = vld [vmem:[%s1045_s5 + $0x18] sm:$0xff] (!%p240_p9)  ;;  %s549_s22 = scalar_lea.sflag (!%p240_p9), [#allocation3], %s267_s14 }
  0x11   : > { %700 = vmatprep.subr.bf16.mxu1 (!%p240_p9), %v831_v3  ;;  %v710_v18 = vpack.c.bf16 (!%p240_p9), %v447_v16, %v446_v15  ;;  %v713_v20 = vpack.c.bf16 (!%p240_p9), %v449_v19, %v448_v17  ;;  %v450_v21 = vld [vmem:[%s1045_s5 + $0x20] sm:$0xff] (!%p240_p9)  ;;  %v451_v22 = vld [vmem:[%s1045_s5 + $0x28] sm:$0xff] (!%p240_p9)  ;;  %v452_v29 = vld [vmem:[%s1045_s5 + $0x30] sm:$0xff] (!%p240_p9) }
  0x12   : > { %v716_v23 = vpack.c.bf16 (!%p240_p9), %v451_v22, %v450_v21  ;;  %v627_v24 = vld [vmem:[%s1042_s2] ss:$0 sm:$0xff] (!%p240_p9)  ;;  %v453_v30 = vld [vmem:[%s1045_s5 + $0x38] sm:$0xff] (!%p240_p9) }
  0x13   : > { %711 = vmatpush3.bf16.msra.mxu0 (!%p240_p9), %v710_v18  ;;  %v719_v31 = vpack.c.bf16 (!%p240_p9), %v453_v30, %v452_v29  ;;  %v629_v32 = vld [vmem:[%s1044_s4] ss:$0 sm:$0xff] (!%p240_p9) }
  0x14   : > { %702 = vmatpush3.bf16.msra.mxu1 (!%p240_p9), %v701_v7  ;;  %712 = vmatprep.subr.bf16.mxu0 (!%p240_p9), %v831_v3  ;;  %v631_v37 = vld [vmem:[%s1046_s6] ss:$0 sm:$0xff] (!%p240_p9) }
  0x15   : > { %s271_s21 = scalar_select %p270_p10, %s896_s28, 1  ;;  %703 = vmatprep.subr.bf16.mxu1 %v831_v3 }
  0x16   : > { %s834_s28 = smov [#allocation2]  }
  0x17   : > { %s626_s9 = sshll.u32 %s271_s21, 3  ;;  %714 = vmatpush3.bf16.msra.mxu0 %v713_v20  ;;  %s997_s21 = scalar_lea.hbm %s1047_s7, %s634_s16 }
  0x18   : > { %s273_s15 = scalar_lea.vmem %s1040_s0, %s626_s9  ;;  %715 = vmatprep.subr.bf16.mxu0 %v831_v3  ;;  %s771_s29 = sshll.u32 %s834_s28, 4  ;;  %s772_s29 = int_to_ptr.vmem [resolvable:$false] %s771_s29 }
  0x19   : > { %v274_v10 = vld [vmem:[%s273_s15] sm:$0xff]  ;;  %s625_s15 = sshll.u32 %s267_s14, 3  ;;  %s773_s8 = scalar_lea.vmem %s772_s29, 256 }
  0x1a   : > { %665 = vmatmul.mubr.msk.f32.vlgmr.msra.gmra.mrb[0].mxu1 %vm286_vm1, %v274_v10  ;;  %s269_s17 = scalar_lea.vmem [#allocation2], %s625_s15 }
  0x1b   : > { %705 = vmatpush3.bf16.msra.mxu1 %v704_v11  ;;  %675 = vmatprep.mubr.msk.f32.mxu1 %vm832_vm0, %v833_v6  ;;  %s562_s18 = sshll.u32 %s269_s17, 4  ;;  %s999_s18 = int_to_ptr.vmem [resolvable:$true] %s562_s18 }
  0x1c   : > { %706 = vmatprep.subr.bf16.mxu1 %v831_v3  ;;  %717 = vmatpush3.bf16.msra.mxu0 %v716_v23  ;;  %s767_s23 = scalar_lea.vmem %s999_s18, 128  ;;  %p774_p0 = scmp.lt.s32.totalorder %s999_s18, %s772_s29 }
  0x1d   : > { %718 = vmatprep.subr.bf16.mxu0 %v831_v3  ;;  %p768_p11 = scmp.ne.s32.totalorder %s999_s18, %s767_s23  ;;  %p775_p1 = scmp.lt.s32.totalorder %s773_s8, %s767_s23 }
  0x1f   : > { %708 = vmatpush3.bf16.msra.mxu1 %v707_v14  ;;  %p769_p12 = pnand %p768_p11, %p913_p5  ;;  %p776_p2 = por %p775_p1, %p774_p0 }
  0x20   : > { %720 = vmatpush3.bf16.msra.mxu0 %v719_v31 }
  0x21   : > { %p770_p13 = pneg %p769_p12 }
  0x23   : > { %p777_p3 = pnand %p776_p2, %p770_p13 }
  0xed   : > { %v356_v25 = vpop.f32.mrb[0].mxu1 }
  0xee   : > { %v357_v26 = vadd.f32 %v627_v24, %v356_v25  ;;  %v666_v27 = vpop.f32.mrb[1].mxu1 }
  0xf0   : > { %v360_v28 = vmax.f32 %v357_v26, 0.0 }
  0xf2   : > { %676 = vmatmul.mubr.msk.f32.vlgmr.msra.gmra.mrb[2].mxu1 %vm286_vm1, %v360_v28 }
 0x1c5   : > { %v441_v33 = vpop.f32.mrb[2].mxu1 }
 0x1c6   : > { %v442_v34 = vadd.f32 %v629_v32, %v441_v33  ;;  %v677_v35 = vpop.f32.mrb[3].mxu1 }
 0x1c8   : > { %v445_v36 = vmax.f32 %v442_v34, 0.0 }
 0x1ca   : > { %695 = vmatmul.mubr.msk.f32.vlgmr.msra.gmra.mrb[0].mxu0 %vm461_vm2, %v445_v36 }
 0x29d   : > { %v531_v38 = vpop.f32.mrb[0].mxu0 }
 0x29e   : > { %v532_v39 = vadd.f32 %v631_v37, %v531_v38  ;;  %v696_v40 = vpop.f32.mrb[1].mxu0 }
 0x2a0   : > { %v535_v41 = vmax.f32 %v532_v39, 0.0 }
 0x2a2   : > { %v536_v42 = vsel %vm286_vm1, %v535_v41, -inf }
 0x2a3   : > { %537 = vmax.xlane.f32.xlu0 %v536_v42 }
 0x330   : > { %v538_v43 = vpop.xlane.xlu0 %537 }
 0x331   : > { %v539_v44 = vsub.f32 %v535_v41, %v538_v43 }
 0x333   : > { %v540_v45 = vmul.f32 1.442695, %v539_v44 }
 0x335   : > { %763 = vpow2.f32 %v540_v45 }
 0x33f   : > { %v764_v46 = vpop.eup %763 }
 0x340   : > { %v542_v47 = vsel %vm286_vm1, %v764_v46, 0.0 }
 0x341   : > { %543 = vadd.xlane.f32.xlu0 %v542_v47 }
 0x3ce   : > { %v544_v48 = vpop.xlane.xlu0 %543 }
 0x3cf   : > { %765 = vrcp.f32 %v544_v48 }
 0x3d9   : > { %v766_v49 = vpop.eup %765 }
 0x3da   : > { %v546_v50 = vmul.f32 %v766_v49, %v764_v46 }
 0x3dc   : > { %547 = vst.msk [vmem:[%s269_s17] sm:$0xff] %vm286_vm1, %v546_v50 }
 0x3dd   : > { %780 = shalt.err (!%p777_p3)
}
 0x3de   : > { %s781_s9 = scalar_lea.hbm %s997_s21, 128  ;;  %s785_s15 = scalar_lea.hbm %s1047_s7, 256 }
 0x3df   : > { %p782_p4 = scmp.ne.s32.totalorder %s997_s21, %s781_s9  ;;  %p786_p9 = scmp.lt.u32.totalorder %s997_s21, %s1047_s7 }
 0x3e0   : > { %p787_p10 = scmp.lt.u32.totalorder %s785_s15, %s781_s9  ;;  %p789_p12 = scmp.lt.u32.totalorder %s781_s9, %s997_s21 }
 0x3e1   : > { %p783_p7 = pnand %p782_p4, %p913_p5 }
 0x3e2   : > { %p788_p11 = por %p787_p10, %p786_p9 }
 0x3e3   : > { %p784_p8 = pneg %p783_p7 }
 0x3e4   : > { %p790_p13 = por %p789_p12, %p788_p11 }
 0x3e6   : > { %p791_p0 = pnand %p790_p13, %p784_p8 }
 0x3e8   : > { %794 = shalt.err (!%p791_p0)
}
 0x3e9   : > { %721 = dma.vmem_to_hbm [thread:$0]  (%p913_p5), %s999_s18, 128, %s997_s21, %s549_s22  }
 0x3ea PF: > { %p727_p1 = scmp.ge.s32.totalorder %s829_s27, 2  ;;  %s574_s19 = sand.u32 1, %s817_s24  }
 0x3eb   : > { %s575_s20 = scalar_lea.sflag [#allocation3], %s574_s19 }
 0x3ec   : > { %p724_p2 = pnand %p727_p1, %p917_p6 }
 0x3ee   : > { %812 = dma.done.wait (!%p724_p2), %s575_s20, 128  }
 0x3ef   : > { %814 = vsyncadd (!%p724_p2), %s575_s20, 4294967168  ;;  %p17_p3 = scmp.ge.s32.totalorder %s900_s30, 4   ;;  %s1050_s24 = smov %s821_s25 }
 0x3f0   : > { %s1051_s25 = smov %s825_s26  ;;  %s1052_s26 = smov %s911_s10 }
 0x3f1   : > { %s1053_s27 = smov %s900_s30  ;;  %19 = sbr.rel (!%p17_p3) target bundleno = 3 (0x3), region = 83 }
 0x3f8   :  { %580 = vsyncpa [#allocation3], 1 }
 0x3f9   :  { %582 = vsyncpa [#allocation3 + $0x1], 1 }

</bundles_post_ra>
